<compile_context>
chip_gen: v7x
topology: tpu7x:2x2x1
jax: 0.10.0
libtpu: 0.0.40
codegen_flags: <defaults>
</compile_context>

<pallas_src>
import functools

import jax
import jax.numpy as jnp
from jax.experimental import pallas as pl
from jax.experimental.pallas import tpu as pltpu


def _round_up(x: int, m: int) -> int:
    return ((x + m - 1) // m) * m


def _choose_tiles(B, N, D, itemsize,
                  target_bytes=2 << 20,      # ~2 MiB input tile per grid step
                  max_tile_bytes=4 << 20):   # hard cap (double-buffered => 8 MiB)
    """Pick (TB, TN) tile sizes and padded (B_pad, N_pad, D_pad) extents."""
    D_pad = _round_up(D, 128)        # lane-dense last dim
    N8 = _round_up(N, 8)             # sublane-dense reduction dim
    b8 = _round_up(B, 8)

    row_bytes = N8 * D_pad * itemsize  # one batch row at full N
    if 8 * row_bytes <= max_tile_bytes:
        # Full-N tiles: size TB so the input tile is ~target_bytes.
        TB = max(8, (target_bytes // row_bytes) // 8 * 8)
        TB = min(TB, b8)
        # Prefer >= 2 batch grid steps when batch is big enough (v7x has 2 TCs;
        # "parallel" batch axis lets Mosaic shard grid steps across them).
        if b8 >= 16 and TB >= b8:
            TB = max(8, ((b8 // 2) // 8) * 8)
        TN = N8
        N_pad = N8
    else:
        # N*D too large for a full-N tile: tile the reduction axis and
        # accumulate in an f32 VMEM scratch across the (last, "arbitrary") axis.
        TB = 8
        TN = max(8, (target_bytes // (TB * D_pad * itemsize)) // 8 * 8)
        N_pad = _round_up(N, TN)

    B_pad = _round_up(B, TB)
    return TB, TN, B_pad, N_pad, D_pad


def _mean_agg_kernel(x_ref, o_ref, acc_ref, *, inv_n: float):
    # x_ref: (TB, TN, D_pad) block; o_ref: (TB, D_pad); acc_ref: (TB, D_pad) f32
    k = pl.program_id(1)  # reduction (num_points) grid axis, last / "arbitrary"

    @pl.when(k == 0)
    def _init():
        acc_ref[...] = jnp.zeros_like(acc_ref)

    # Fold the f32 widen into the sublane reduce (no materialized f32 tile copy).
    acc_ref[...] += jnp.sum(x_ref[...], axis=1, dtype=jnp.float32)

    @pl.when(k == pl.num_programs(1) - 1)
    def _finalize():
        # inv_n uses the TRUE num_points; zero-padded tail rows add nothing.
        o_ref[...] = (acc_ref[...] * inv_n).astype(o_ref.dtype)


@jax.jit
def mean_aggregator(rs_i: jax.Array) -> jax.Array:
    """Pallas implementation of MeanAggregator.forward: mean over dim=1."""
    B, N, D = rs_i.shape
    itemsize = jnp.dtype(rs_i.dtype).itemsize
    TB, TN, B_pad, N_pad, D_pad = _choose_tiles(B, N, D, itemsize)

    pads = ((0, B_pad - B), (0, N_pad - N), (0, D_pad - D))
    x = jnp.pad(rs_i, pads) if any(hi for _, hi in pads) else rs_i

    grid = (B_pad // TB, N_pad // TN)  # (batch tiles, reduction tiles last)

    out = pl.pallas_call(
        functools.partial(_mean_agg_kernel, inv_n=1.0 / N),
        out_shape=jax.ShapeDtypeStruct((B_pad, D_pad), rs_i.dtype),
        grid_spec=pltpu.PrefetchScalarGridSpec(
            num_scalar_prefetch=0,
            grid=grid,
            in_specs=[pl.BlockSpec((TB, TN, D_pad), lambda b, k: (b, k, 0))],
            # Output block is sublane-dense (TB >= 8) and lane-dense
            # (D_pad % 128 == 0); same block across the reduction axis.
            out_specs=pl.BlockSpec((TB, D_pad), lambda b, k: (b, 0)),
            scratch_shapes=[pltpu.VMEM((TB, D_pad), jnp.float32)],
        ),
        compiler_params=pltpu.CompilerParams(
            dimension_semantics=("parallel", "arbitrary"),
        ),
    )(x)

    return out[:B, :D]


class MeanAggregator:
    """Thin wrapper mirroring the PyTorch module interface (no parameters)."""

    def __init__(self, x_dim: int, rs_dim):
        self.x_dim = x_dim
        self.r_dim = rs_dim if isinstance(rs_dim, tuple) else (rs_dim, 1)

    def __call__(self, rs_i, x_context=None, x_target=None):
        return mean_aggregator(rs_i)


if __name__ == "__main__":
    key = jax.random.PRNGKey(0)
    k0, k1 = jax.random.split(key)

    # Small shape matching the module's (batch, num_points, r_dim) layout.
    batch, num_points, r_dim = 2, 8, 32
    rs_i = jax.random.normal(k0, (batch, num_points, r_dim), dtype=jnp.float32)

    agg = MeanAggregator(x_dim=4, rs_dim=r_dim)
    out = jax.block_until_ready(agg(rs_i))
    ref = jnp.mean(rs_i, axis=1)
    assert out.shape == (batch, r_dim)
    assert jnp.allclose(out, ref, atol=1e-5, rtol=1e-5)

    # Second shape exercising batch tiling + lane/sublane zero-padding paths.
    B2, N2, D2 = 16, 40, 160
    rs_i2 = jax.random.normal(k1, (B2, N2, D2), dtype=jnp.float32)
    out2 = jax.block_until_ready(mean_aggregator(rs_i2))
    ref2 = jnp.mean(rs_i2, axis=1)
    assert out2.shape == (B2, D2)
    assert jnp.allclose(out2, ref2, atol=1e-5, rtol=1e-5)

    print("KERNEL_OK")
</pallas_src>

<mosaic_0001>
module attributes {stable_mosaic.version = 11 : i64} {
  func.func @_mean_agg_kernel(%arg0: i32, %arg1: i32, %arg2: memref<8x8x128xf32, #tpu.memory_space<vmem>>, %arg3: memref<8x128xf32, #tpu.memory_space<vmem>>, %arg4: memref<8x128xf32, #tpu.memory_space<vmem>>) attributes {dimension_semantics = [#tpu.dimension_semantics<parallel>, #tpu.dimension_semantics<arbitrary>], iteration_bounds = array<i64: 1, 1>, scalar_prefetch = 0 : i64, scratch_operands = 1 : i64, tpu.core_type = #tpu.core_type<tc>, window_params = [{transform_indices = @transform_0, window_bounds = array<i64: 8, 8, 128>}, {transform_indices = @transform_1, window_bounds = array<i64: 8, 128>}]} {
    %c0_i32 = arith.constant 0 : i32
    %0 = arith.cmpi eq, %arg1, %c0_i32 : i32
    %1 = arith.extui %0 : i1 to i32
    %c0_i32_0 = arith.constant 0 : i32
    %2 = arith.cmpi ne, %1, %c0_i32_0 : i32
    scf.if %2 {
      %cst_9 = arith.constant 0.000000e+00 : f32
      %11 = vector.broadcast %cst_9 : f32 to vector<8x128xf32>
      %c0_10 = arith.constant 0 : index
      %c0_11 = arith.constant 0 : index
      %12 = vector.load %arg4[%c0_10, %c0_11] : memref<8x128xf32, #tpu.memory_space<vmem>>, vector<8x128xf32>
      tpu.vector_store %arg4[%c0_10, %c0_11], %11 {strides = array<i32>} : memref<8x128xf32, #tpu.memory_space<vmem>>, vector<8x128xf32>,
    } else {
    }
    %c0 = arith.constant 0 : index
    %c0_1 = arith.constant 0 : index
    %3 = vector.load %arg4[%c0, %c0_1] : memref<8x128xf32, #tpu.memory_space<vmem>>, vector<8x128xf32>
    %c0_2 = arith.constant 0 : index
    %c0_3 = arith.constant 0 : index
    %c0_4 = arith.constant 0 : index
    %4 = vector.load %arg2[%c0_2, %c0_3, %c0_4] : memref<8x8x128xf32, #tpu.memory_space<vmem>>, vector<8x8x128xf32>
    %cst = arith.constant dense<0.000000e+00> : vector<8x128xf32>
    %5 = vector.multi_reduction <add>, %4, %cst [1] : vector<8x8x128xf32> to vector<8x128xf32>
    %6 = arith.addf %3, %5 : vector<8x128xf32>
    %c0_5 = arith.constant 0 : index
    %c0_6 = arith.constant 0 : index
    %7 = vector.load %arg4[%c0_5, %c0_6] : memref<8x128xf32, #tpu.memory_space<vmem>>, vector<8x128xf32>
    tpu.vector_store %arg4[%c0_5, %c0_6], %6 {strides = array<i32>} : memref<8x128xf32, #tpu.memory_space<vmem>>, vector<8x128xf32>,
    %c0_i32_7 = arith.constant 0 : i32
    %8 = arith.cmpi eq, %arg1, %c0_i32_7 : i32
    %9 = arith.extui %8 : i1 to i32
    %c0_i32_8 = arith.constant 0 : i32
    %10 = arith.cmpi ne, %9, %c0_i32_8 : i32
    scf.if %10 {
      %c0_9 = arith.constant 0 : index
      %c0_10 = arith.constant 0 : index
      %11 = vector.load %arg4[%c0_9, %c0_10] : memref<8x128xf32, #tpu.memory_space<vmem>>, vector<8x128xf32>
      %cst_11 = arith.constant 1.250000e-01 : f32
      %12 = vector.broadcast %cst_11 : f32 to vector<8x128xf32>
      %13 = arith.mulf %11, %12 : vector<8x128xf32>
      %c0_12 = arith.constant 0 : index
      %c0_13 = arith.constant 0 : index
      %14 = vector.load %arg3[%c0_12, %c0_13] : memref<8x128xf32, #tpu.memory_space<vmem>>, vector<8x128xf32>
      tpu.vector_store %arg3[%c0_12, %c0_13], %13 {strides = array<i32>} : memref<8x128xf32, #tpu.memory_space<vmem>>, vector<8x128xf32>,
    } else {
    }
    return
  }
  func.func @transform_0(%arg0: i32, %arg1: i32) -> (i32, i32, i32) {
    %c0_i32 = arith.constant 0 : i32
    %c0_i32_0 = arith.constant 0 : i32
    return %arg0, %arg1, %c0_i32 : i32, i32, i32
  }
  func.func @transform_1(%arg0: i32, %arg1: i32) -> (i32, i32) {
    %c0_i32 = arith.constant 0 : i32
    %c0_i32_0 = arith.constant 0 : i32
    return %arg0, %c0_i32 : i32, i32
  }
}

</mosaic_0001>

<bundles_post_ra>
// kernel: mean_aggregator.1
= control target key start
LH: loop header
LB: loop body
LE: loop exit
PB: predicated region body
PF: predicated region fallthrough
CT: control target
= control target key end

     0   :  { %vm78_vm0 = vcmask 1041409   ;;  %vm80_vm1 = vcmask 1042434   ;;  %vm82_vm2 = vcmask 1043459   ;;  %vm84_vm3 = vcmask 1044484   ;;  %s144_s0 = inlined_call_operand.vmem [shape: f32[8,8,128], index: 0, kind: input, shape index: {}]   ;;  %s145_s1 = inlined_call_operand.vmem [shape: f32[8,128], index: 1, kind: output, shape index: {}]  }
   0x1   :  { %v14_v0 = vld [vmem:[%s144_s0] sm:$0xff]  ;;  %v15_v1 = vld [vmem:[%s144_s0 + $0x8] sm:$0xff]  ;;  %v16_v2 = vld [vmem:[%s144_s0 + $0x10] sm:$0xff]  ;;  %vm86_vm4 = vcmask 1045509   ;;  %vm88_vm5 = vcmask 1046534   ;;  %vm90_vm6 = vcmask 1047559  }
   0x2   :  { %v17_v3 = vld [vmem:[%s144_s0 + $0x18] sm:$0xff]  ;;  %v18_v4 = vld [vmem:[%s144_s0 + $0x20] sm:$0xff]  ;;  %v19_v5 = vld [vmem:[%s144_s0 + $0x28] sm:$0xff]  ;;  %v22_v6 = vrot.slane %v14_v0, 4  ;;  %v28_v7 = vrot.slane %v15_v1, 4  ;;  %v34_v8 = vrot.slane %v16_v2, 4 }
   0x3   :  { %v20_v9 = vld [vmem:[%s144_s0 + $0x30] sm:$0xff]  ;;  %v21_v10 = vld [vmem:[%s144_s0 + $0x38] sm:$0xff]  ;;  %v40_v11 = vrot.slane %v17_v3, 4  ;;  %v46_v12 = vrot.slane %v18_v4, 4  ;;  %v52_v13 = vrot.slane %v19_v5, 4 }
   0x4   :  { %v23_v14 = vadd.f32 %v22_v6, %v14_v0  ;;  %v29_v15 = vadd.f32 %v28_v7, %v15_v1  ;;  %v35_v16 = vadd.f32 %v34_v8, %v16_v2  ;;  %v58_v17 = vrot.slane %v20_v9, 4 }
   0x5   :  { %v41_v18 = vadd.f32 %v40_v11, %v17_v3  ;;  %v47_v19 = vadd.f32 %v46_v12, %v18_v4  ;;  %v53_v20 = vadd.f32 %v52_v13, %v19_v5  ;;  %v64_v21 = vrot.slane %v21_v10, 4 }
   0x6   :  { %v24_v22 = vrot.slane %v23_v14, 2  ;;  %v30_v23 = vrot.slane %v29_v15, 2  ;;  %v36_v24 = vrot.slane %v35_v16, 2  ;;  %v59_v25 = vadd.f32 %v58_v17, %v20_v9 }
   0x7   :  { %v42_v26 = vrot.slane %v41_v18, 2  ;;  %v48_v27 = vrot.slane %v47_v19, 2  ;;  %v54_v28 = vrot.slane %v53_v20, 2  ;;  %v65_v29 = vadd.f32 %v64_v21, %v21_v10 }
   0x8   :  { %v25_v30 = vadd.f32 %v24_v22, %v23_v14  ;;  %v31_v31 = vadd.f32 %v30_v23, %v29_v15  ;;  %v37_v32 = vadd.f32 %v36_v24, %v35_v16  ;;  %v60_v33 = vrot.slane %v59_v25, 2 }
   0x9   :  { %v43_v34 = vadd.f32 %v42_v26, %v41_v18  ;;  %v49_v35 = vadd.f32 %v48_v27, %v47_v19  ;;  %v55_v36 = vadd.f32 %v54_v28, %v53_v20  ;;  %v66_v37 = vrot.slane %v65_v29, 2 }
   0xa   :  { %v26_v38 = vrot.slane %v25_v30, 1  ;;  %v32_v39 = vrot.slane %v31_v31, 1  ;;  %v38_v40 = vrot.slane %v37_v32, 1  ;;  %v61_v41 = vadd.f32 %v60_v33, %v59_v25 }
   0xb   :  { %v44_v42 = vrot.slane %v43_v34, 1  ;;  %v50_v43 = vrot.slane %v49_v35, 1  ;;  %v56_v44 = vrot.slane %v55_v36, 1  ;;  %v67_v45 = vadd.f32 %v66_v37, %v65_v29 }
   0xc   :  { %v27_v46 = vadd.f32 %v26_v38, %v25_v30  ;;  %v33_v47 = vadd.f32 %v32_v39, %v31_v31  ;;  %v39_v48 = vadd.f32 %v38_v40, %v37_v32  ;;  %v62_v49 = vrot.slane %v61_v41, 1 }
   0xd   :  { %v45_v50 = vadd.f32 %v44_v42, %v43_v34  ;;  %v51_v51 = vadd.f32 %v50_v43, %v49_v35  ;;  %v68_v52 = vrot.slane %v67_v45, 1  ;;  %v57_v53 = vadd.f32 %v56_v44, %v55_v36 }
   0xe   :  { %v79_v54 = vsel %vm78_vm0, %v33_v47, %v27_v46  ;;  %v63_v55 = vadd.f32 %v62_v49, %v61_v41 }
   0xf   :  { %v81_v56 = vsel %vm80_vm1, %v39_v48, %v79_v54  ;;  %v69_v57 = vadd.f32 %v68_v52, %v67_v45 }
  0x10   :  { %v83_v58 = vsel %vm82_vm2, %v45_v50, %v81_v56 }
  0x11   :  { %v85_v59 = vsel %vm84_vm3, %v51_v51, %v83_v58 }
  0x12   :  { %v87_v60 = vsel %vm86_vm4, %v57_v53, %v85_v59 }
  0x13   :  { %v89_v61 = vsel %vm88_vm5, %v63_v55, %v87_v60 }
  0x14   :  { %v91_v62 = vsel %vm90_vm6, %v69_v57, %v89_v61 }
  0x15   :  { %v99_v63 = vmul.f32 0.125, %v91_v62 }
  0x17   :  { %100 = vst [vmem:[%s145_s1] sm:$0xff] %v99_v63 }

</bundles_post_ra>
